<compile_context>
chip_gen: v7x
topology: tpu7x:2x2x1
jax: 0.10.0
libtpu: 0.0.40
codegen_flags: <defaults>
</compile_context>

<pallas_src>
import numpy as np
import jax
import jax.numpy as jnp
from jax import lax
from jax.experimental import pallas as pl
from jax.experimental.pallas import tpu as pltpu

EPS = 1e-5


# ----------------------------- pallas plumbing ------------------------------

def _full_spec(shape):
    nd = len(shape)
    return pl.BlockSpec(shape, lambda i, _nd=nd: (0,) * _nd)


# ------------------------------ fused kernel --------------------------------

def _make_fused_kernel(N, H, W, Cin, Cb, Cout_b):
    Ho, Wo = H // 2, W // 2
    R = N * Ho * Wo                    # number of output pixels (= lanes per phase)

    def mac_conv1x1(wT, xcm):
        # (Co, Ci) x (Ci, P) -> (Co, P) as f32 VPU broadcast-MACs
        # (lane-broadcast weight column * sublane-broadcast pixel row).
        acc = wT[:, 0:1] * xcm[0:1, :]
        for ci in range(1, xcm.shape[0]):
            acc = acc + wT[:, ci:ci + 1] * xcm[ci:ci + 1, :]
        return acc

    def bn(y, gamma, beta):
        # train-mode BatchNorm, per-channel (sublane) stats over lanes, two-pass.
        m = jnp.mean(y, axis=-1, keepdims=True)
        v = jnp.mean((y - m) ** 2, axis=-1, keepdims=True)
        return (y - m) * lax.rsqrt(v + EPS) * gamma + beta

    def kernel(x_ref, w1_ref, g2_ref, be2_ref, w3_ref, g4_ref, be4_ref,
               w5_ref, g6_ref, be6_ref, opool_ref, obr_ref):
        # x: (Cin, 4*R).  Lanes are phase-major: p = 2*(row parity) + (col parity),
        # then (n, oi, oj) within each phase slab of R lanes.
        x = x_ref[...]

        # ---- stage 1: grouped 1x1 conv (channel shuffle folded into the weight
        #      rows) + train-mode BN2 + ReLU.  Conv bias b1 cancels inside BN2.
        y = mac_conv1x1(w1_ref[...], x)                               # (Cb, 4R)
        h = jnp.maximum(bn(y, g2_ref[...], be2_ref[...]), 0.0)

        # ---- stage 2: depthwise 3x3 stride-2 conv on h and 3x3 stride-2
        #      avg-pool (count_include_pad) on x.  Each of the 9 taps is one
        #      phase slab, lane-rolled by {1, Wo, Wo+1} for the -1 shifts and
        #      multiplied by a 0/1 halo mask.  Conv bias b3 cancels in BN4.
        lane = lax.broadcasted_iota(jnp.int32, (1, R), 1)
        mcol = (lane % Wo != 0).astype(jnp.float32)                   # oj == 0 -> 0
        mrow = (lane % (Ho * Wo) >= Wo).astype(jnp.float32)           # oi == 0 -> 0
        mboth = mcol * mrow

        hph = [h[:, p * R:(p + 1) * R] for p in range(4)]             # (Cb, R)
        xph = [x[:, p * R:(p + 1) * R] for p in range(4)]             # (Cin, R)
        w3 = w3_ref[...]                                              # (Cb, 9)

        z = jnp.zeros((Cb, R), jnp.float32)
        pool = jnp.zeros((Cin, R), jnp.float32)
        for kh in range(3):
            a = 0 if kh == 1 else 1          # row parity of the tapped input row
            di = -1 if kh == 0 else 0        # phase-row shift
            for kw in range(3):
                b = 0 if kw == 1 else 1
                dj = -1 if kw == 0 else 0
                p = 2 * a + b
                shift = (Wo if di else 0) + (1 if dj else 0)
                hp, xp = hph[p], xph[p]
                if shift:
                    hp = pltpu.roll(hp, shift, axis=1)
                    xp = pltpu.roll(xp, shift, axis=1)
                    m = mboth if (di and dj) else (mrow if di else mcol)
                    hp = hp * m
                    xp = xp * m
                t = 3 * kh + kw
                z = z + w3[:, t:t + 1] * hp
                pool = pool + xp

        # pooled (identity) half of the output: avg / 9, ReLU.
        opool_ref[...] = jnp.maximum(pool * (1.0 / 9.0), 0.0)

        # ---- stage 3: BN4 -> grouped 1x1 conv (b5 cancels) -> BN6 -> ReLU.
        zn = bn(z, g4_ref[...], be4_ref[...])
        yb = mac_conv1x1(w5_ref[...], zn)                             # (Cout_b, R)
        obr_ref[...] = jnp.maximum(bn(yb, g6_ref[...], be6_ref[...]), 0.0)

    return kernel


# ----------------------------------- glue -----------------------------------

def _grouped_1x1_to_dense(w, cin, cout, groups):
    """torch (cout, cin//groups, 1, 1) grouped 1x1 weight -> dense (cin, cout)."""
    cin_g = cin // groups
    cout_g = cout // groups
    wnp = np.asarray(w).reshape(cout, cin_g)
    dense = np.zeros((cin, cout), np.float32)
    for co in range(cout):
        g = co // cout_g
        dense[g * cin_g:(g + 1) * cin_g, co] = wnp[co]
    return dense


def prepare_params(params, in_channels, groups=3):
    """Host-side prep: grouped 1x1 convs as dense (block-diagonal) matrices in
    channel-major orientation, channel shuffle folded into conv1/bn2,
    BN-cancelled conv biases dropped, per-channel params as (C, 1) columns."""
    w1, b1, g2, be2, w3, b3, g4, be4, w5, b5, g6, be6 = params
    del b1, b3, b5   # cancel exactly inside the following train-mode BatchNorms
    cb = w1.shape[0]
    cout_b = w5.shape[0]

    w1_dense = _grouped_1x1_to_dense(w1, in_channels, cb, groups)     # (Cin, Cb)
    w5_dense = _grouped_1x1_to_dense(w5, cb, cout_b, groups)          # (Cb, Cout_b)

    # Fold shuffle_channels into the conv1 / bn2 output-channel ordering.
    cpg = cb // groups
    perm = np.array([g * cpg + c for c in range(cpg) for g in range(groups)],
                    dtype=np.int32)
    w1T = np.ascontiguousarray(w1_dense[:, perm].T)                   # (Cb, Cin)
    g2p = np.asarray(g2)[perm].reshape(cb, 1)
    be2p = np.asarray(be2)[perm].reshape(cb, 1)

    return dict(
        w1=jnp.asarray(w1T, jnp.float32),
        g2=jnp.asarray(g2p, jnp.float32),
        be2=jnp.asarray(be2p, jnp.float32),
        w3=jnp.asarray(np.asarray(w3).reshape(cb, 9), jnp.float32),
        g4=jnp.asarray(np.asarray(g4).reshape(cb, 1), jnp.float32),
        be4=jnp.asarray(np.asarray(be4).reshape(cb, 1), jnp.float32),
        w5=jnp.asarray(np.ascontiguousarray(w5_dense.T), jnp.float32),  # (Cout_b, Cb)
        g6=jnp.asarray(np.asarray(g6).reshape(cout_b, 1), jnp.float32),
        be6=jnp.asarray(np.asarray(be6).reshape(cout_b, 1), jnp.float32),
    )


@jax.jit
def _forward(x_nchw, prep):
    N, Cin, H, W = x_nchw.shape
    assert H % 2 == 0 and W % 2 == 0
    Ho, Wo = H // 2, W // 2
    R = N * Ho * Wo
    Cb = prep['w1'].shape[0]
    Cout_b = prep['w5'].shape[0]
    Cout = Cin + Cout_b

    # Channel-major space-to-depth: (N,C,H,W) -> (C, row-parity, col-parity,
    # N, Ho, Wo) -> (C, 4*R).  Pure reshape + transpose (no gather).
    x_cm = jnp.transpose(x_nchw.reshape(N, Cin, Ho, 2, Wo, 2),
                         (1, 3, 5, 0, 2, 4)).reshape(Cin, 4 * R)

    kernel = _make_fused_kernel(N, H, W, Cin, Cb, Cout_b)
    args = [x_cm, prep['w1'], prep['g2'], prep['be2'], prep['w3'],
            prep['g4'], prep['be4'], prep['w5'], prep['g6'], prep['be6']]

    pool_cm, br_cm = pl.pallas_call(
        kernel,
        grid=(1,),
        in_specs=[_full_spec(a.shape) for a in args],
        out_specs=(_full_spec((Cin, R)), _full_spec((Cout_b, R))),
        out_shape=(jax.ShapeDtypeStruct((Cin, R), jnp.float32),
                   jax.ShapeDtypeStruct((Cout_b, R), jnp.float32)),
        compiler_params=pltpu.CompilerParams(
            dimension_semantics=("arbitrary",)),
    )(*args)

    # Channel-major outputs: concat is axis-0, then one small transpose to NCHW.
    out_cm = jnp.concatenate([pool_cm, br_cm], axis=0)                # (Cout, R)
    return jnp.transpose(out_cm.reshape(Cout, N, Ho, Wo), (1, 0, 2, 3))


def shufflenet_unit_b_forward(x_nchw, params, groups=3):
    prep = prepare_params(params, in_channels=x_nchw.shape[1], groups=groups)
    return _forward(x_nchw, prep)


# --------------------- deterministic parameter construction ------------------

def init_params(key, in_channels, out_channels, groups=3):
    out_branch = out_channels - in_channels
    assert out_branch % 4 == 0
    cb = out_branch // 4
    ks = jax.random.split(key, 12)

    def nrm(k, shape, scale):
        return scale * jax.random.normal(k, shape, jnp.float32)

    w1 = nrm(ks[0], (cb, in_channels // groups, 1, 1), 0.3)
    b1 = nrm(ks[1], (cb,), 0.1)
    g2 = 1.0 + 0.1 * jax.random.normal(ks[2], (cb,), jnp.float32)
    be2 = nrm(ks[3], (cb,), 0.1)
    w3 = nrm(ks[4], (cb, 1, 3, 3), 0.3)
    b3 = nrm(ks[5], (cb,), 0.1)
    g4 = 1.0 + 0.1 * jax.random.normal(ks[6], (cb,), jnp.float32)
    be4 = nrm(ks[7], (cb,), 0.1)
    w5 = nrm(ks[8], (out_branch, cb // groups, 1, 1), 0.3)
    b5 = nrm(ks[9], (out_branch,), 0.1)
    g6 = 1.0 + 0.1 * jax.random.normal(ks[10], (out_branch,), jnp.float32)
    be6 = nrm(ks[11], (out_branch,), 0.1)
    return (w1, b1, g2, be2, w3, b3, g4, be4, w5, b5, g6, be6)


# ------------------------- pure-JAX reference (check) ------------------------

def reference_forward(x, params, groups=3):
    w1, b1, g2, be2, w3, b3, g4, be4, w5, b5, g6, be6 = params
    cb = w1.shape[0]
    dn = ('NCHW', 'OIHW', 'NCHW')
    P = lax.Precision.HIGHEST   # true-f32 convs so the check against the f32 kernel is tight

    def bn(y, gamma, beta):
        m = jnp.mean(y, axis=(0, 2, 3), keepdims=True)
        v = jnp.mean((y - m) ** 2, axis=(0, 2, 3), keepdims=True)
        return ((y - m) * jax.lax.rsqrt(v + EPS) * gamma.reshape(1, -1, 1, 1)
                + beta.reshape(1, -1, 1, 1))

    out = lax.conv_general_dilated(x, w1, (1, 1), 'VALID', dimension_numbers=dn,
                                   feature_group_count=groups,
                                   precision=P) + b1.reshape(1, -1, 1, 1)
    out = jax.nn.relu(bn(out, g2, be2))
    n, c, hh, ww = out.shape
    out = out.reshape(n, groups, c // groups, hh, ww).transpose(0, 2, 1, 3, 4).reshape(n, c, hh, ww)
    out = lax.conv_general_dilated(out, w3, (2, 2), ((1, 1), (1, 1)), dimension_numbers=dn,
                                   feature_group_count=cb,
                                   precision=P) + b3.reshape(1, -1, 1, 1)
    out = bn(out, g4, be4)
    out = lax.conv_general_dilated(out, w5, (1, 1), 'VALID', dimension_numbers=dn,
                                   feature_group_count=groups,
                                   precision=P) + b5.reshape(1, -1, 1, 1)
    out = bn(out, g6, be6)
    xp = lax.reduce_window(x, 0.0, lax.add, (1, 1, 3, 3), (1, 1, 2, 2),
                           ((0, 0), (0, 0), (1, 1), (1, 1))) / 9.0
    return jax.nn.relu(jnp.concatenate([xp, out], axis=1))


# ----------------------------------- main ------------------------------------

if __name__ == "__main__":
    key = jax.random.PRNGKey(0)
    kx, kp = jax.random.split(key)

    N, Cin, H, W = 2, 6, 16, 16   # in_channels=6, out_channels=30, groups=3
    Cout = 30
    x = jax.random.normal(kx, (N, Cin, H, W), jnp.float32)
    params = init_params(kp, Cin, Cout, groups=3)

    out = jax.block_until_ready(shufflenet_unit_b_forward(x, params, groups=3))
    assert out.shape == (N, Cout, H // 2, W // 2), out.shape

    ref = jax.block_until_ready(reference_forward(x, params, groups=3))
    # Kernel is pure f32 (no bf16 casts), so only summation-order differences
    # remain vs. the f32 reference.
    np.testing.assert_allclose(np.asarray(out), np.asarray(ref),
                               rtol=2e-3, atol=2e-3)
    print("KERNEL_OK")
</pallas_src>

<mosaic_0001>
module attributes {stable_mosaic.version = 11 : i64} {
  func.func @kernel(%arg0: i32, %arg1: memref<6x512xf32, #tpu.memory_space<vmem>>, %arg2: memref<6x6xf32, #tpu.memory_space<vmem>>, %arg3: memref<6x1xf32, #tpu.memory_space<vmem>>, %arg4: memref<6x1xf32, #tpu.memory_space<vmem>>, %arg5: memref<6x9xf32, #tpu.memory_space<vmem>>, %arg6: memref<6x1xf32, #tpu.memory_space<vmem>>, %arg7: memref<6x1xf32, #tpu.memory_space<vmem>>, %arg8: memref<24x6xf32, #tpu.memory_space<vmem>>, %arg9: memref<24x1xf32, #tpu.memory_space<vmem>>, %arg10: memref<24x1xf32, #tpu.memory_space<vmem>>, %arg11: memref<6x128xf32, #tpu.memory_space<vmem>>, %arg12: memref<24x128xf32, #tpu.memory_space<vmem>>) attributes {dimension_semantics = [#tpu.dimension_semantics<arbitrary>], iteration_bounds = array<i64: 1>, scalar_prefetch = 0 : i64, scratch_operands = 0 : i64, tpu.core_type = #tpu.core_type<tc>, window_params = [{pipeline_mode = #tpu.pipeline_mode<synchronous>, transform_indices = @transform_0, window_bounds = array<i64: 6, 512>}, {pipeline_mode = #tpu.pipeline_mode<synchronous>, transform_indices = @transform_1, window_bounds = array<i64: 6, 6>}, {pipeline_mode = #tpu.pipeline_mode<synchronous>, transform_indices = @transform_2, window_bounds = array<i64: 6, 1>}, {pipeline_mode = #tpu.pipeline_mode<synchronous>, transform_indices = @transform_3, window_bounds = array<i64: 6, 1>}, {pipeline_mode = #tpu.pipeline_mode<synchronous>, transform_indices = @transform_4, window_bounds = array<i64: 6, 9>}, {pipeline_mode = #tpu.pipeline_mode<synchronous>, transform_indices = @transform_5, window_bounds = array<i64: 6, 1>}, {pipeline_mode = #tpu.pipeline_mode<synchronous>, transform_indices = @transform_6, window_bounds = array<i64: 6, 1>}, {pipeline_mode = #tpu.pipeline_mode<synchronous>, transform_indices = @transform_7, window_bounds = array<i64: 24, 6>}, {pipeline_mode = #tpu.pipeline_mode<synchronous>, transform_indices = @transform_8, window_bounds = array<i64: 24, 1>}, {pipeline_mode = #tpu.pipeline_mode<synchronous>, transform_indices = @transform_9, window_bounds = array<i64: 24, 1>}, {pipeline_mode = #tpu.pipeline_mode<synchronous>, transform_indices = @transform_10, window_bounds = array<i64: 6, 128>}, {pipeline_mode = #tpu.pipeline_mode<synchronous>, transform_indices = @transform_11, window_bounds = array<i64: 24, 128>}]} {
    %c0 = arith.constant 0 : index
    %c0_0 = arith.constant 0 : index
    %0 = vector.load %arg1[%c0, %c0_0] : memref<6x512xf32, #tpu.memory_space<vmem>>, vector<6x512xf32>
    %c0_1 = arith.constant 0 : index
    %c0_2 = arith.constant 0 : index
    %1 = vector.load %arg2[%c0_1, %c0_2] : memref<6x6xf32, #tpu.memory_space<vmem>>, vector<6x6xf32>
    %2 = vector.extract_strided_slice %1 {offsets = [0, 0], sizes = [6, 1], strides = [1, 1]} : vector<6x6xf32> to vector<6x1xf32>
    %3 = vector.extract_strided_slice %0 {offsets = [0, 0], sizes = [1, 512], strides = [1, 1]} : vector<6x512xf32> to vector<1x512xf32>
    %4 = vector.broadcast %2 : vector<6x1xf32> to vector<6x512xf32>
    %5 = vector.broadcast %3 : vector<1x512xf32> to vector<6x512xf32>
    %6 = arith.mulf %4, %5 : vector<6x512xf32>
    %7 = vector.extract_strided_slice %1 {offsets = [0, 1], sizes = [6, 1], strides = [1, 1]} : vector<6x6xf32> to vector<6x1xf32>
    %8 = vector.extract_strided_slice %0 {offsets = [1, 0], sizes = [1, 512], strides = [1, 1]} : vector<6x512xf32> to vector<1x512xf32>
    %9 = vector.broadcast %7 : vector<6x1xf32> to vector<6x512xf32>
    %10 = vector.broadcast %8 : vector<1x512xf32> to vector<6x512xf32>
    %11 = arith.mulf %9, %10 : vector<6x512xf32>
    %12 = arith.addf %6, %11 : vector<6x512xf32>
    %13 = vector.extract_strided_slice %1 {offsets = [0, 2], sizes = [6, 1], strides = [1, 1]} : vector<6x6xf32> to vector<6x1xf32>
    %14 = vector.extract_strided_slice %0 {offsets = [2, 0], sizes = [1, 512], strides = [1, 1]} : vector<6x512xf32> to vector<1x512xf32>
    %15 = vector.broadcast %13 : vector<6x1xf32> to vector<6x512xf32>
    %16 = vector.broadcast %14 : vector<1x512xf32> to vector<6x512xf32>
    %17 = arith.mulf %15, %16 : vector<6x512xf32>
    %18 = arith.addf %12, %17 : vector<6x512xf32>
    %19 = vector.extract_strided_slice %1 {offsets = [0, 3], sizes = [6, 1], strides = [1, 1]} : vector<6x6xf32> to vector<6x1xf32>
    %20 = vector.extract_strided_slice %0 {offsets = [3, 0], sizes = [1, 512], strides = [1, 1]} : vector<6x512xf32> to vector<1x512xf32>
    %21 = vector.broadcast %19 : vector<6x1xf32> to vector<6x512xf32>
    %22 = vector.broadcast %20 : vector<1x512xf32> to vector<6x512xf32>
    %23 = arith.mulf %21, %22 : vector<6x512xf32>
    %24 = arith.addf %18, %23 : vector<6x512xf32>
    %25 = vector.extract_strided_slice %1 {offsets = [0, 4], sizes = [6, 1], strides = [1, 1]} : vector<6x6xf32> to vector<6x1xf32>
    %26 = vector.extract_strided_slice %0 {offsets = [4, 0], sizes = [1, 512], strides = [1, 1]} : vector<6x512xf32> to vector<1x512xf32>
    %27 = vector.broadcast %25 : vector<6x1xf32> to vector<6x512xf32>
    %28 = vector.broadcast %26 : vector<1x512xf32> to vector<6x512xf32>
    %29 = arith.mulf %27, %28 : vector<6x512xf32>
    %30 = arith.addf %24, %29 : vector<6x512xf32>
    %31 = vector.extract_strided_slice %1 {offsets = [0, 5], sizes = [6, 1], strides = [1, 1]} : vector<6x6xf32> to vector<6x1xf32>
    %32 = vector.extract_strided_slice %0 {offsets = [5, 0], sizes = [1, 512], strides = [1, 1]} : vector<6x512xf32> to vector<1x512xf32>
    %33 = vector.broadcast %31 : vector<6x1xf32> to vector<6x512xf32>
    %34 = vector.broadcast %32 : vector<1x512xf32> to vector<6x512xf32>
    %35 = arith.mulf %33, %34 : vector<6x512xf32>
    %36 = arith.addf %30, %35 : vector<6x512xf32>
    %c0_3 = arith.constant 0 : index
    %c0_4 = arith.constant 0 : index
    %37 = vector.load %arg3[%c0_3, %c0_4] : memref<6x1xf32, #tpu.memory_space<vmem>>, vector<6x1xf32>
    %c0_5 = arith.constant 0 : index
    %c0_6 = arith.constant 0 : index
    %38 = vector.load %arg4[%c0_5, %c0_6] : memref<6x1xf32, #tpu.memory_space<vmem>>, vector<6x1xf32>
    %cst = arith.constant dense<0.000000e+00> : vector<6xf32>
    %39 = vector.multi_reduction <add>, %36, %cst [1] : vector<6x512xf32> to vector<6xf32>
    %40 = vector.shape_cast %39 : vector<6xf32> to vector<6x1xf32>
    %cst_7 = arith.constant 5.120000e+02 : f32
    %41 = vector.broadcast %cst_7 : f32 to vector<6x1xf32>
    %42 = arith.divf %40, %41 : vector<6x1xf32>
    %43 = vector.broadcast %42 : vector<6x1xf32> to vector<6x512xf32>
    %44 = arith.subf %36, %43 : vector<6x512xf32>
    %45 = arith.mulf %44, %44 : vector<6x512xf32>
    %cst_8 = arith.constant dense<0.000000e+00> : vector<6xf32>
    %46 = vector.multi_reduction <add>, %45, %cst_8 [1] : vector<6x512xf32> to vector<6xf32>
    %47 = vector.shape_cast %46 : vector<6xf32> to vector<6x1xf32>
    %cst_9 = arith.constant 5.120000e+02 : f32
    %48 = vector.broadcast %cst_9 : f32 to vector<6x1xf32>
    %49 = arith.divf %47, %48 : vector<6x1xf32>
    %50 = vector.broadcast %42 : vector<6x1xf32> to vector<6x512xf32>
    %51 = arith.subf %36, %50 : vector<6x512xf32>
    %cst_10 = arith.constant 9.99999974E-6 : f32
    %52 = vector.broadcast %cst_10 : f32 to vector<6x1xf32>
    %53 = arith.addf %49, %52 : vector<6x1xf32>
    %54 = math.rsqrt %53 : vector<6x1xf32>
    %55 = vector.broadcast %54 : vector<6x1xf32> to vector<6x512xf32>
    %56 = arith.mulf %51, %55 : vector<6x512xf32>
    %57 = vector.broadcast %37 : vector<6x1xf32> to vector<6x512xf32>
    %58 = arith.mulf %56, %57 : vector<6x512xf32>
    %59 = vector.broadcast %38 : vector<6x1xf32> to vector<6x512xf32>
    %60 = arith.addf %58, %59 : vector<6x512xf32>
    %cst_11 = arith.constant 0.000000e+00 : f32
    %61 = vector.broadcast %cst_11 : f32 to vector<6x512xf32>
    %62 = arith.maximumf %60, %61 : vector<6x512xf32>
    %63 = tpu.iota {dimensions = array<i32: 1>} : vector<1x128xi32>
    %c8_i32 = arith.constant 8 : i32
    %c0_i32 = arith.constant 0 : i32
    %64 = arith.cmpi eq, %c8_i32, %c0_i32 : i32
    %c1_i32 = arith.constant 1 : i32
    %65 = arith.select %64, %c1_i32, %c8_i32 : i32
    %66 = vector.broadcast %65 : i32 to vector<1x128xi32>
    %67 = arith.remsi %63, %66 : vector<1x128xi32>
    %c0_i32_12 = arith.constant 0 : i32
    %68 = vector.broadcast %c0_i32_12 : i32 to vector<1x128xi32>
    %69 = arith.cmpi ne, %67, %68 : vector<1x128xi32>
    %c0_i32_13 = arith.constant 0 : i32
    %70 = vector.broadcast %c0_i32_13 : i32 to vector<1x128xi32>
    %71 = arith.cmpi slt, %67, %70 : vector<1x128xi32>
    %c0_i32_14 = arith.constant 0 : i32
    %72 = arith.cmpi slt, %65, %c0_i32_14 : i32
    %73 = vector.broadcast %72 : i1 to vector<1x128xi1>
    %74 = vector.broadcast %73 : vector<1x128xi1> to vector<1x128xi1>
    %75 = arith.xori %71, %74 : vector<1x128xi1>
    %76 = arith.andi %75, %69 : vector<1x128xi1>
    %77 = vector.broadcast %65 : i32 to vector<1x128xi32>
    %78 = arith.addi %67, %77 : vector<1x128xi32>
    %79 = arith.select %76, %78, %67 : vector<1x128xi1>, vector<1x128xi32>
    %c0_i32_15 = arith.constant 0 : i32
    %80 = vector.broadcast %c0_i32_15 : i32 to vector<1x128xi32>
    %81 = arith.cmpi ne, %79, %80 : vector<1x128xi32>
    %82 = arith.extui %81 : vector<1x128xi1> to vector<1x128xi32>
    %83 = arith.sitofp %82 : vector<1x128xi32> to vector<1x128xf32>
    %c64_i32 = arith.constant 64 : i32
    %c0_i32_16 = arith.constant 0 : i32
    %84 = arith.cmpi eq, %c64_i32, %c0_i32_16 : i32
    %c1_i32_17 = arith.constant 1 : i32
    %85 = arith.select %84, %c1_i32_17, %c64_i32 : i32
    %86 = vector.broadcast %85 : i32 to vector<1x128xi32>
    %87 = arith.remsi %63, %86 : vector<1x128xi32>
    %c0_i32_18 = arith.constant 0 : i32
    %88 = vector.broadcast %c0_i32_18 : i32 to vector<1x128xi32>
    %89 = arith.cmpi ne, %87, %88 : vector<1x128xi32>
    %c0_i32_19 = arith.constant 0 : i32
    %90 = vector.broadcast %c0_i32_19 : i32 to vector<1x128xi32>
    %91 = arith.cmpi slt, %87, %90 : vector<1x128xi32>
    %c0_i32_20 = arith.constant 0 : i32
    %92 = arith.cmpi slt, %85, %c0_i32_20 : i32
    %93 = vector.broadcast %92 : i1 to vector<1x128xi1>
    %94 = vector.broadcast %93 : vector<1x128xi1> to vector<1x128xi1>
    %95 = arith.xori %91, %94 : vector<1x128xi1>
    %96 = arith.andi %95, %89 : vector<1x128xi1>
    %97 = vector.broadcast %85 : i32 to vector<1x128xi32>
    %98 = arith.addi %87, %97 : vector<1x128xi32>
    %99 = arith.select %96, %98, %87 : vector<1x128xi1>, vector<1x128xi32>
    %c8_i32_21 = arith.constant 8 : i32
    %100 = vector.broadcast %c8_i32_21 : i32 to vector<1x128xi32>
    %101 = arith.cmpi sge, %99, %100 : vector<1x128xi32>
    %102 = arith.extui %101 : vector<1x128xi1> to vector<1x128xi32>
    %103 = arith.sitofp %102 : vector<1x128xi32> to vector<1x128xf32>
    %104 = arith.mulf %83, %103 : vector<1x128xf32>
    %105 = vector.extract_strided_slice %62 {offsets = [0, 0], sizes = [6, 128], strides = [1, 1]} : vector<6x512xf32> to vector<6x128xf32>
    %106 = vector.extract_strided_slice %62 {offsets = [0, 128], sizes = [6, 128], strides = [1, 1]} : vector<6x512xf32> to vector<6x128xf32>
    %107 = vector.extract_strided_slice %62 {offsets = [0, 256], sizes = [6, 128], strides = [1, 1]} : vector<6x512xf32> to vector<6x128xf32>
    %108 = vector.extract_strided_slice %62 {offsets = [0, 384], sizes = [6, 128], strides = [1, 1]} : vector<6x512xf32> to vector<6x128xf32>
    %109 = vector.extract_strided_slice %0 {offsets = [0, 0], sizes = [6, 128], strides = [1, 1]} : vector<6x512xf32> to vector<6x128xf32>
    %110 = vector.extract_strided_slice %0 {offsets = [0, 128], sizes = [6, 128], strides = [1, 1]} : vector<6x512xf32> to vector<6x128xf32>
    %111 = vector.extract_strided_slice %0 {offsets = [0, 256], sizes = [6, 128], strides = [1, 1]} : vector<6x512xf32> to vector<6x128xf32>
    %112 = vector.extract_strided_slice %0 {offsets = [0, 384], sizes = [6, 128], strides = [1, 1]} : vector<6x512xf32> to vector<6x128xf32>
    %c0_22 = arith.constant 0 : index
    %c0_23 = arith.constant 0 : index
    %113 = vector.load %arg5[%c0_22, %c0_23] : memref<6x9xf32, #tpu.memory_space<vmem>>, vector<6x9xf32>
    %cst_24 = arith.constant 0.000000e+00 : f32
    %114 = vector.broadcast %cst_24 : f32 to vector<6x128xf32>
    %cst_25 = arith.constant 0.000000e+00 : f32
    %115 = vector.broadcast %cst_25 : f32 to vector<6x128xf32>
    %c9_i32 = arith.constant 9 : i32
    %116 = tpu.dynamic_rotate %108 by %c9_i32 dim 1 : vector<6x128xf32>, i32 -> vector<6x128xf32>
    %c9_i32_26 = arith.constant 9 : i32
    %117 = tpu.dynamic_rotate %112 by %c9_i32_26 dim 1 : vector<6x128xf32>, i32 -> vector<6x128xf32>
    %118 = vector.broadcast %104 : vector<1x128xf32> to vector<6x128xf32>
    %119 = arith.mulf %116, %118 : vector<6x128xf32>
    %120 = vector.broadcast %104 : vector<1x128xf32> to vector<6x128xf32>
    %121 = arith.mulf %117, %120 : vector<6x128xf32>
    %122 = vector.extract_strided_slice %113 {offsets = [0, 0], sizes = [6, 1], strides = [1, 1]} : vector<6x9xf32> to vector<6x1xf32>
    %123 = vector.broadcast %122 : vector<6x1xf32> to vector<6x128xf32>
    %124 = arith.mulf %123, %119 : vector<6x128xf32>
    %125 = arith.addf %114, %124 : vector<6x128xf32>
    %126 = arith.addf %115, %121 : vector<6x128xf32>
    %c8_i32_27 = arith.constant 8 : i32
    %127 = tpu.dynamic_rotate %107 by %c8_i32_27 dim 1 : vector<6x128xf32>, i32 -> vector<6x128xf32>
    %c8_i32_28 = arith.constant 8 : i32
    %128 = tpu.dynamic_rotate %111 by %c8_i32_28 dim 1 : vector<6x128xf32>, i32 -> vector<6x128xf32>
    %129 = vector.broadcast %103 : vector<1x128xf32> to vector<6x128xf32>
    %130 = arith.mulf %127, %129 : vector<6x128xf32>
    %131 = vector.broadcast %103 : vector<1x128xf32> to vector<6x128xf32>
    %132 = arith.mulf %128, %131 : vector<6x128xf32>
    %133 = vector.extract_strided_slice %113 {offsets = [0, 1], sizes = [6, 1], strides = [1, 1]} : vector<6x9xf32> to vector<6x1xf32>
    %134 = vector.broadcast %133 : vector<6x1xf32> to vector<6x128xf32>
    %135 = arith.mulf %134, %130 : vector<6x128xf32>
    %136 = arith.addf %125, %135 : vector<6x128xf32>
    %137 = arith.addf %126, %132 : vector<6x128xf32>
    %c8_i32_29 = arith.constant 8 : i32
    %138 = tpu.dynamic_rotate %108 by %c8_i32_29 dim 1 : vector<6x128xf32>, i32 -> vector<6x128xf32>
    %c8_i32_30 = arith.constant 8 : i32
    %139 = tpu.dynamic_rotate %112 by %c8_i32_30 dim 1 : vector<6x128xf32>, i32 -> vector<6x128xf32>
    %140 = vector.broadcast %103 : vector<1x128xf32> to vector<6x128xf32>
    %141 = arith.mulf %138, %140 : vector<6x128xf32>
    %142 = vector.broadcast %103 : vector<1x128xf32> to vector<6x128xf32>
    %143 = arith.mulf %139, %142 : vector<6x128xf32>
    %144 = vector.extract_strided_slice %113 {offsets = [0, 2], sizes = [6, 1], strides = [1, 1]} : vector<6x9xf32> to vector<6x1xf32>
    %145 = vector.broadcast %144 : vector<6x1xf32> to vector<6x128xf32>
    %146 = arith.mulf %145, %141 : vector<6x128xf32>
    %147 = arith.addf %136, %146 : vector<6x128xf32>
    %148 = arith.addf %137, %143 : vector<6x128xf32>
    %c1_i32_31 = arith.constant 1 : i32
    %149 = tpu.dynamic_rotate %106 by %c1_i32_31 dim 1 : vector<6x128xf32>, i32 -> vector<6x128xf32>
    %c1_i32_32 = arith.constant 1 : i32
    %150 = tpu.dynamic_rotate %110 by %c1_i32_32 dim 1 : vector<6x128xf32>, i32 -> vector<6x128xf32>
    %151 = vector.broadcast %83 : vector<1x128xf32> to vector<6x128xf32>
    %152 = arith.mulf %149, %151 : vector<6x128xf32>
    %153 = vector.broadcast %83 : vector<1x128xf32> to vector<6x128xf32>
    %154 = arith.mulf %150, %153 : vector<6x128xf32>
    %155 = vector.extract_strided_slice %113 {offsets = [0, 3], sizes = [6, 1], strides = [1, 1]} : vector<6x9xf32> to vector<6x1xf32>
    %156 = vector.broadcast %155 : vector<6x1xf32> to vector<6x128xf32>
    %157 = arith.mulf %156, %152 : vector<6x128xf32>
    %158 = arith.addf %147, %157 : vector<6x128xf32>
    %159 = arith.addf %148, %154 : vector<6x128xf32>
    %160 = vector.extract_strided_slice %113 {offsets = [0, 4], sizes = [6, 1], strides = [1, 1]} : vector<6x9xf32> to vector<6x1xf32>
    %161 = vector.broadcast %160 : vector<6x1xf32> to vector<6x128xf32>
    %162 = arith.mulf %161, %105 : vector<6x128xf32>
    %163 = arith.addf %158, %162 : vector<6x128xf32>
    %164 = arith.addf %159, %109 : vector<6x128xf32>
    %165 = vector.extract_strided_slice %113 {offsets = [0, 5], sizes = [6, 1], strides = [1, 1]} : vector<6x9xf32> to vector<6x1xf32>
    %166 = vector.broadcast %165 : vector<6x1xf32> to vector<6x128xf32>
    %167 = arith.mulf %166, %106 : vector<6x128xf32>
    %168 = arith.addf %163, %167 : vector<6x128xf32>
    %169 = arith.addf %164, %110 : vector<6x128xf32>
    %c1_i32_33 = arith.constant 1 : i32
    %170 = tpu.dynamic_rotate %108 by %c1_i32_33 dim 1 : vector<6x128xf32>, i32 -> vector<6x128xf32>
    %c1_i32_34 = arith.constant 1 : i32
    %171 = tpu.dynamic_rotate %112 by %c1_i32_34 dim 1 : vector<6x128xf32>, i32 -> vector<6x128xf32>
    %172 = vector.broadcast %83 : vector<1x128xf32> to vector<6x128xf32>
    %173 = arith.mulf %170, %172 : vector<6x128xf32>
    %174 = vector.broadcast %83 : vector<1x128xf32> to vector<6x128xf32>
    %175 = arith.mulf %171, %174 : vector<6x128xf32>
    %176 = vector.extract_strided_slice %113 {offsets = [0, 6], sizes = [6, 1], strides = [1, 1]} : vector<6x9xf32> to vector<6x1xf32>
    %177 = vector.broadcast %176 : vector<6x1xf32> to vector<6x128xf32>
    %178 = arith.mulf %177, %173 : vector<6x128xf32>
    %179 = arith.addf %168, %178 : vector<6x128xf32>
    %180 = arith.addf %169, %175 : vector<6x128xf32>
    %181 = vector.extract_strided_slice %113 {offsets = [0, 7], sizes = [6, 1], strides = [1, 1]} : vector<6x9xf32> to vector<6x1xf32>
    %182 = vector.broadcast %181 : vector<6x1xf32> to vector<6x128xf32>
    %183 = arith.mulf %182, %107 : vector<6x128xf32>
    %184 = arith.addf %179, %183 : vector<6x128xf32>
    %185 = arith.addf %180, %111 : vector<6x128xf32>
    %186 = vector.extract_strided_slice %113 {offsets = [0, 8], sizes = [6, 1], strides = [1, 1]} : vector<6x9xf32> to vector<6x1xf32>
    %187 = vector.broadcast %186 : vector<6x1xf32> to vector<6x128xf32>
    %188 = arith.mulf %187, %108 : vector<6x128xf32>
    %189 = arith.addf %184, %188 : vector<6x128xf32>
    %190 = arith.addf %185, %112 : vector<6x128xf32>
    %cst_35 = arith.constant 0.111111112 : f32
    %191 = vector.broadcast %cst_35 : f32 to vector<6x128xf32>
    %192 = arith.mulf %190, %191 : vector<6x128xf32>
    %cst_36 = arith.constant 0.000000e+00 : f32
    %193 = vector.broadcast %cst_36 : f32 to vector<6x128xf32>
    %194 = arith.maximumf %192, %193 : vector<6x128xf32>
    %c0_37 = arith.constant 0 : index
    %c0_38 = arith.constant 0 : index
    %195 = vector.load %arg11[%c0_37, %c0_38] : memref<6x128xf32, #tpu.memory_space<vmem>>, vector<6x128xf32>
    tpu.vector_store %arg11[%c0_37, %c0_38], %194 {strides = array<i32>} : memref<6x128xf32, #tpu.memory_space<vmem>>, vector<6x128xf32>,
    %c0_39 = arith.constant 0 : index
    %c0_40 = arith.constant 0 : index
    %196 = vector.load %arg6[%c0_39, %c0_40] : memref<6x1xf32, #tpu.memory_space<vmem>>, vector<6x1xf32>
    %c0_41 = arith.constant 0 : index
    %c0_42 = arith.constant 0 : index
    %197 = vector.load %arg7[%c0_41, %c0_42] : memref<6x1xf32, #tpu.memory_space<vmem>>, vector<6x1xf32>
    %cst_43 = arith.constant dense<0.000000e+00> : vector<6xf32>
    %198 = vector.multi_reduction <add>, %189, %cst_43 [1] : vector<6x128xf32> to vector<6xf32>
    %199 = vector.shape_cast %198 : vector<6xf32> to vector<6x1xf32>
    %cst_44 = arith.constant 1.280000e+02 : f32
    %200 = vector.broadcast %cst_44 : f32 to vector<6x1xf32>
    %201 = arith.divf %199, %200 : vector<6x1xf32>
    %202 = vector.broadcast %201 : vector<6x1xf32> to vector<6x128xf32>
    %203 = arith.subf %189, %202 : vector<6x128xf32>
    %204 = arith.mulf %203, %203 : vector<6x128xf32>
    %cst_45 = arith.constant dense<0.000000e+00> : vector<6xf32>
    %205 = vector.multi_reduction <add>, %204, %cst_45 [1] : vector<6x128xf32> to vector<6xf32>
    %206 = vector.shape_cast %205 : vector<6xf32> to vector<6x1xf32>
    %cst_46 = arith.constant 1.280000e+02 : f32
    %207 = vector.broadcast %cst_46 : f32 to vector<6x1xf32>
    %208 = arith.divf %206, %207 : vector<6x1xf32>
    %209 = vector.broadcast %201 : vector<6x1xf32> to vector<6x128xf32>
    %210 = arith.subf %189, %209 : vector<6x128xf32>
    %cst_47 = arith.constant 9.99999974E-6 : f32
    %211 = vector.broadcast %cst_47 : f32 to vector<6x1xf32>
    %212 = arith.addf %208, %211 : vector<6x1xf32>
    %213 = math.rsqrt %212 : vector<6x1xf32>
    %214 = vector.broadcast %213 : vector<6x1xf32> to vector<6x128xf32>
    %215 = arith.mulf %210, %214 : vector<6x128xf32>
    %216 = vector.broadcast %196 : vector<6x1xf32> to vector<6x128xf32>
    %217 = arith.mulf %215, %216 : vector<6x128xf32>
    %218 = vector.broadcast %197 : vector<6x1xf32> to vector<6x128xf32>
    %219 = arith.addf %217, %218 : vector<6x128xf32>
    %c0_48 = arith.constant 0 : index
    %c0_49 = arith.constant 0 : index
    %220 = vector.load %arg8[%c0_48, %c0_49] : memref<24x6xf32, #tpu.memory_space<vmem>>, vector<24x6xf32>
    %221 = vector.extract_strided_slice %220 {offsets = [0, 0], sizes = [24, 1], strides = [1, 1]} : vector<24x6xf32> to vector<24x1xf32>
    %222 = vector.extract_strided_slice %219 {offsets = [0, 0], sizes = [1, 128], strides = [1, 1]} : vector<6x128xf32> to vector<1x128xf32>
    %223 = vector.broadcast %221 : vector<24x1xf32> to vector<24x128xf32>
    %224 = vector.broadcast %222 : vector<1x128xf32> to vector<24x128xf32>
    %225 = arith.mulf %223, %224 : vector<24x128xf32>
    %226 = vector.extract_strided_slice %220 {offsets = [0, 1], sizes = [24, 1], strides = [1, 1]} : vector<24x6xf32> to vector<24x1xf32>
    %227 = vector.extract_strided_slice %219 {offsets = [1, 0], sizes = [1, 128], strides = [1, 1]} : vector<6x128xf32> to vector<1x128xf32>
    %228 = vector.broadcast %226 : vector<24x1xf32> to vector<24x128xf32>
    %229 = vector.broadcast %227 : vector<1x128xf32> to vector<24x128xf32>
    %230 = arith.mulf %228, %229 : vector<24x128xf32>
    %231 = arith.addf %225, %230 : vector<24x128xf32>
    %232 = vector.extract_strided_slice %220 {offsets = [0, 2], sizes = [24, 1], strides = [1, 1]} : vector<24x6xf32> to vector<24x1xf32>
    %233 = vector.extract_strided_slice %219 {offsets = [2, 0], sizes = [1, 128], strides = [1, 1]} : vector<6x128xf32> to vector<1x128xf32>
    %234 = vector.broadcast %232 : vector<24x1xf32> to vector<24x128xf32>
    %235 = vector.broadcast %233 : vector<1x128xf32> to vector<24x128xf32>
    %236 = arith.mulf %234, %235 : vector<24x128xf32>
    %237 = arith.addf %231, %236 : vector<24x128xf32>
    %238 = vector.extract_strided_slice %220 {offsets = [0, 3], sizes = [24, 1], strides = [1, 1]} : vector<24x6xf32> to vector<24x1xf32>
    %239 = vector.extract_strided_slice %219 {offsets = [3, 0], sizes = [1, 128], strides = [1, 1]} : vector<6x128xf32> to vector<1x128xf32>
    %240 = vector.broadcast %238 : vector<24x1xf32> to vector<24x128xf32>
    %241 = vector.broadcast %239 : vector<1x128xf32> to vector<24x128xf32>
    %242 = arith.mulf %240, %241 : vector<24x128xf32>
    %243 = arith.addf %237, %242 : vector<24x128xf32>
    %244 = vector.extract_strided_slice %220 {offsets = [0, 4], sizes = [24, 1], strides = [1, 1]} : vector<24x6xf32> to vector<24x1xf32>
    %245 = vector.extract_strided_slice %219 {offsets = [4, 0], sizes = [1, 128], strides = [1, 1]} : vector<6x128xf32> to vector<1x128xf32>
    %246 = vector.broadcast %244 : vector<24x1xf32> to vector<24x128xf32>
    %247 = vector.broadcast %245 : vector<1x128xf32> to vector<24x128xf32>
    %248 = arith.mulf %246, %247 : vector<24x128xf32>
    %249 = arith.addf %243, %248 : vector<24x128xf32>
    %250 = vector.extract_strided_slice %220 {offsets = [0, 5], sizes = [24, 1], strides = [1, 1]} : vector<24x6xf32> to vector<24x1xf32>
    %251 = vector.extract_strided_slice %219 {offsets = [5, 0], sizes = [1, 128], strides = [1, 1]} : vector<6x128xf32> to vector<1x128xf32>
    %252 = vector.broadcast %250 : vector<24x1xf32> to vector<24x128xf32>
    %253 = vector.broadcast %251 : vector<1x128xf32> to vector<24x128xf32>
    %254 = arith.mulf %252, %253 : vector<24x128xf32>
    %255 = arith.addf %249, %254 : vector<24x128xf32>
    %c0_50 = arith.constant 0 : index
    %c0_51 = arith.constant 0 : index
    %256 = vector.load %arg9[%c0_50, %c0_51] : memref<24x1xf32, #tpu.memory_space<vmem>>, vector<24x1xf32>
    %c0_52 = arith.constant 0 : index
    %c0_53 = arith.constant 0 : index
    %257 = vector.load %arg10[%c0_52, %c0_53] : memref<24x1xf32, #tpu.memory_space<vmem>>, vector<24x1xf32>
    %cst_54 = arith.constant dense<0.000000e+00> : vector<24xf32>
    %258 = vector.multi_reduction <add>, %255, %cst_54 [1] : vector<24x128xf32> to vector<24xf32>
    %259 = vector.shape_cast %258 : vector<24xf32> to vector<24x1xf32>
    %cst_55 = arith.constant 1.280000e+02 : f32
    %260 = vector.broadcast %cst_55 : f32 to vector<24x1xf32>
    %261 = arith.divf %259, %260 : vector<24x1xf32>
    %262 = vector.broadcast %261 : vector<24x1xf32> to vector<24x128xf32>
    %263 = arith.subf %255, %262 : vector<24x128xf32>
    %264 = arith.mulf %263, %263 : vector<24x128xf32>
    %cst_56 = arith.constant dense<0.000000e+00> : vector<24xf32>
    %265 = vector.multi_reduction <add>, %264, %cst_56 [1] : vector<24x128xf32> to vector<24xf32>
    %266 = vector.shape_cast %265 : vector<24xf32> to vector<24x1xf32>
    %cst_57 = arith.constant 1.280000e+02 : f32
    %267 = vector.broadcast %cst_57 : f32 to vector<24x1xf32>
    %268 = arith.divf %266, %267 : vector<24x1xf32>
    %269 = vector.broadcast %261 : vector<24x1xf32> to vector<24x128xf32>
    %270 = arith.subf %255, %269 : vector<24x128xf32>
    %cst_58 = arith.constant 9.99999974E-6 : f32
    %271 = vector.broadcast %cst_58 : f32 to vector<24x1xf32>
    %272 = arith.addf %268, %271 : vector<24x1xf32>
    %273 = math.rsqrt %272 : vector<24x1xf32>
    %274 = vector.broadcast %273 : vector<24x1xf32> to vector<24x128xf32>
    %275 = arith.mulf %270, %274 : vector<24x128xf32>
    %276 = vector.broadcast %256 : vector<24x1xf32> to vector<24x128xf32>
    %277 = arith.mulf %275, %276 : vector<24x128xf32>
    %278 = vector.broadcast %257 : vector<24x1xf32> to vector<24x128xf32>
    %279 = arith.addf %277, %278 : vector<24x128xf32>
    %cst_59 = arith.constant 0.000000e+00 : f32
    %280 = vector.broadcast %cst_59 : f32 to vector<24x128xf32>
    %281 = arith.maximumf %279, %280 : vector<24x128xf32>
    %c0_60 = arith.constant 0 : index
    %c0_61 = arith.constant 0 : index
    %282 = vector.load %arg12[%c0_60, %c0_61] : memref<24x128xf32, #tpu.memory_space<vmem>>, vector<24x128xf32>
    tpu.vector_store %arg12[%c0_60, %c0_61], %281 {strides = array<i32>} : memref<24x128xf32, #tpu.memory_space<vmem>>, vector<24x128xf32>,
    return
  }
  func.func @transform_0(%arg0: i32) -> (i32, i32) {
    %c0_i32 = arith.constant 0 : i32
    %c0_i32_0 = arith.constant 0 : i32
    %c0_i32_1 = arith.constant 0 : i32
    return %c0_i32, %c0_i32_0 : i32, i32
  }
  func.func @transform_1(%arg0: i32) -> (i32, i32) {
    %c0_i32 = arith.constant 0 : i32
    %c0_i32_0 = arith.constant 0 : i32
    %c0_i32_1 = arith.constant 0 : i32
    return %c0_i32, %c0_i32_0 : i32, i32
  }
  func.func @transform_2(%arg0: i32) -> (i32, i32) {
    %c0_i32 = arith.constant 0 : i32
    %c0_i32_0 = arith.constant 0 : i32
    %c0_i32_1 = arith.constant 0 : i32
    return %c0_i32, %c0_i32_0 : i32, i32
  }
  func.func @transform_3(%arg0: i32) -> (i32, i32) {
    %c0_i32 = arith.constant 0 : i32
    %c0_i32_0 = arith.constant 0 : i32
    %c0_i32_1 = arith.constant 0 : i32
    return %c0_i32, %c0_i32_0 : i32, i32
  }
  func.func @transform_4(%arg0: i32) -> (i32, i32) {
    %c0_i32 = arith.constant 0 : i32
    %c0_i32_0 = arith.constant 0 : i32
    %c0_i32_1 = arith.constant 0 : i32
    return %c0_i32, %c0_i32_0 : i32, i32
  }
  func.func @transform_5(%arg0: i32) -> (i32, i32) {
    %c0_i32 = arith.constant 0 : i32
    %c0_i32_0 = arith.constant 0 : i32
    %c0_i32_1 = arith.constant 0 : i32
    return %c0_i32, %c0_i32_0 : i32, i32
  }
  func.func @transform_6(%arg0: i32) -> (i32, i32) {
    %c0_i32 = arith.constant 0 : i32
    %c0_i32_0 = arith.constant 0 : i32
    %c0_i32_1 = arith.constant 0 : i32
    return %c0_i32, %c0_i32_0 : i32, i32
  }
  func.func @transform_7(%arg0: i32) -> (i32, i32) {
    %c0_i32 = arith.constant 0 : i32
    %c0_i32_0 = arith.constant 0 : i32
    %c0_i32_1 = arith.constant 0 : i32
    return %c0_i32, %c0_i32_0 : i32, i32
  }
  func.func @transform_8(%arg0: i32) -> (i32, i32) {
    %c0_i32 = arith.constant 0 : i32
    %c0_i32_0 = arith.constant 0 : i32
    %c0_i32_1 = arith.constant 0 : i32
    return %c0_i32, %c0_i32_0 : i32, i32
  }
  func.func @transform_9(%arg0: i32) -> (i32, i32) {
    %c0_i32 = arith.constant 0 : i32
    %c0_i32_0 = arith.constant 0 : i32
    %c0_i32_1 = arith.constant 0 : i32
    return %c0_i32, %c0_i32_0 : i32, i32
  }
  func.func @transform_10(%arg0: i32) -> (i32, i32) {
    %c0_i32 = arith.constant 0 : i32
    %c0_i32_0 = arith.constant 0 : i32
    %c0_i32_1 = arith.constant 0 : i32
    return %c0_i32, %c0_i32_0 : i32, i32
  }
  func.func @transform_11(%arg0: i32) -> (i32, i32) {
    %c0_i32 = arith.constant 0 : i32
    %c0_i32_0 = arith.constant 0 : i32
    %c0_i32_1 = arith.constant 0 : i32
    return %c0_i32, %c0_i32_0 : i32, i32
  }
}

</mosaic_0001>

<bundles_post_ra>
// kernel: _forward.1
= control target key start
LH: loop header
LB: loop body
LE: loop exit
PB: predicated region body
PF: predicated region fallthrough
CT: control target
= control target key end

     0   :  { %v705_v0 = vmov 0   ;;  %v706_v1 = vmov 2   ;;  %v707_v3 = vmov 1   ;;  %v708_v4 = vmov 3   ;;  %s715_s29 = smov 8   ;;  %s716_s30 = smov 1   ;;  %s1047_s1 = inlined_call_operand.vmem [shape: f32[6,6], index: 1, kind: input, shape index: {}]   ;;  %s1048_s0 = inlined_call_operand.vmem [shape: f32[6,512], index: 0, kind: input, shape index: {}]   ;;  %s1049_s2 = inlined_call_operand.vmem [shape: f32[6,1], index: 2, kind: input, shape index: {}]   ;;  %s1050_s4 = inlined_call_operand.vmem [shape: f32[6,9], index: 4, kind: input, shape index: {}]   ;;  %s1051_s3 = inlined_call_operand.vmem [shape: f32[6,1], index: 3, kind: input, shape index: {}]   ;;  %s1052_s6 = inlined_call_operand.vmem [shape: f32[6,1], index: 6, kind: input, shape index: {}]   ;;  %s1053_s7 = inlined_call_operand.vmem [shape: f32[24,6], index: 7, kind: input, shape index: {}]   ;;  %s1054_s5 = inlined_call_operand.vmem [shape: f32[6,1], index: 5, kind: input, shape index: {}]   ;;  %s1055_s8 = inlined_call_operand.vmem [shape: f32[24,1], index: 8, kind: input, shape index: {}]   ;;  %s1056_s9 = inlined_call_operand.vmem [shape: f32[24,1], index: 9, kind: input, shape index: {}]   ;;  %s1057_s10 = inlined_call_operand.vmem [shape: f32[6,128], index: 10, kind: output, shape index: {0}]   ;;  %s1058_s11 = inlined_call_operand.vmem [shape: f32[24,128], index: 11, kind: output, shape index: {1}]  }
   0x1   :  { %665 = vset.pattern.permute.xlu0 %v705_v0  ;;  %667 = vset.pattern.permute.xlu1 %v706_v1  ;;  %v41_v2 = vld [vmem:[%s1047_s1] sm:$0x3f]  ;;  %v709_v5 = vmov 4   ;;  %v710_v6 = vmov 5   ;;  %v47_v7 = vlaneseq  ;;  %v800_v11 = vld [vmem:[%s1048_s0 + $0x8] sm:$0x3f] }
   0x2   :  { %44 = vperm.xlu0 %665, %v41_v2   ;;  %96 = vperm.xlu1 %667, %v41_v2   ;;  %v795_v10 = vld [vmem:[%s1048_s0] sm:$0x3f]  ;;  %v807_v13 = vld [vmem:[%s1048_s0 + $0x10] sm:$0x3f]  ;;  %v812_v14 = vld [vmem:[%s1048_s0 + $0x18] sm:$0x3f] }
   0x3   :  { %v48_v8 = vshrl.u32 %v47_v7, 7  ;;  %vm209_vm0 = vcmask 1045504  }
   0x5   :  { %v790_v9 = vsub.s32 0, %v48_v8  ;;  %v802_v12 = vsub.s32 2, %v48_v8  ;;  %v814_v15 = vsub.s32 1, %v48_v8  ;;  %v820_v18 = vsub.s32 3, %v48_v8 }
   0x6   :  { %666 = vset.pattern.permute.xlu0 %v707_v3  ;;  %668 = vset.pattern.permute.xlu1 %v708_v4  ;;  %v828_v22 = vsub.s32 4, %v48_v8  ;;  %v836_v28 = vsub.s32 5, %v48_v8 }
   0x7   :  { %68 = vperm.xlu0 %666, %v41_v2   ;;  %124 = vperm.xlu1 %668, %v41_v2   ;;  %v50_v16 = vrot.slane %v795_v10, %v790_v9  ;;  %v54_v17 = vrot.slane %v800_v11, %v790_v9  ;;  %v58_v19 = vrot.slane %v807_v13, %v790_v9 }
   0x8   :  { %v62_v20 = vrot.slane %v812_v14, %v790_v9  ;;  %v102_v21 = vrot.slane %v795_v10, %v802_v12  ;;  %v106_v25 = vrot.slane %v800_v11, %v802_v12  ;;  %v110_v26 = vrot.slane %v807_v13, %v802_v12 }
   0x9   :  { %v114_v27 = vrot.slane %v812_v14, %v802_v12  ;;  %v74_v29 = vrot.slane %v795_v10, %v814_v15  ;;  %v78_v30 = vrot.slane %v800_v11, %v814_v15  ;;  %v82_v31 = vrot.slane %v807_v13, %v814_v15 }
   0xa   :  { %v86_v32 = vrot.slane %v812_v14, %v814_v15  ;;  %v130_v33 = vrot.slane %v795_v10, %v820_v18  ;;  %v134_v34 = vrot.slane %v800_v11, %v820_v18  ;;  %v138_v35 = vrot.slane %v807_v13, %v820_v18 }
   0xb   :  { %669 = vset.pattern.permute.xlu1 %v709_v5  ;;  %670 = vset.pattern.permute.xlu0 %v710_v6  ;;  %v142_v36 = vrot.slane %v812_v14, %v820_v18  ;;  %v158_v37 = vrot.slane %v795_v10, %v828_v22  ;;  %v162_v38 = vrot.slane %v800_v11, %v828_v22 }
   0xc   :  { %152 = vperm.xlu1 %669, %v41_v2   ;;  %180 = vperm.xlu0 %670, %v41_v2   ;;  %v166_v39 = vrot.slane %v807_v13, %v828_v22  ;;  %v170_v40 = vrot.slane %v812_v14, %v828_v22  ;;  %v186_v41 = vrot.slane %v795_v10, %v836_v28 }
   0xd   :  { %v190_v42 = vrot.slane %v800_v11, %v836_v28  ;;  %v194_v43 = vrot.slane %v807_v13, %v836_v28  ;;  %v198_v44 = vrot.slane %v812_v14, %v836_v28 }
  0x10   :  { %671 = vset.pattern.permute.xlu1 %v705_v0  ;;  %672 = vset.pattern.permute.xlu0 %v705_v0 }
  0x81   :  { %v45_v23 = vpop.permute.xlu0 %44  ;;  %v97_v24 = vpop.permute.xlu1 %96 }
  0x82   :  { %v63_v45 = vmul.f32 %v50_v16, %v45_v23  ;;  %v64_v46 = vmul.f32 %v54_v17, %v45_v23  ;;  %v65_v47 = vmul.f32 %v58_v19, %v45_v23  ;;  %v66_v48 = vmul.f32 %v62_v20, %v45_v23 }
  0x83   :  { %v115_v55 = vmul.f32 %v102_v21, %v97_v24  ;;  %v116_v56 = vmul.f32 %v106_v25, %v97_v24  ;;  %v117_v57 = vmul.f32 %v110_v26, %v97_v24  ;;  %v118_v58 = vmul.f32 %v114_v27, %v97_v24 }
  0x86   :  { %v69_v49 = vpop.permute.xlu0 %68  ;;  %v125_v50 = vpop.permute.xlu1 %124 }
  0x87   :  { %v87_v51 = vmul.f32 %v74_v29, %v69_v49  ;;  %v88_v52 = vmul.f32 %v78_v30, %v69_v49  ;;  %v89_v53 = vmul.f32 %v82_v31, %v69_v49  ;;  %v90_v54 = vmul.f32 %v86_v32, %v69_v49 }
  0x88   :  { %v143_v63 = vmul.f32 %v130_v33, %v125_v50  ;;  %v144_v2 = vmul.f32 %v134_v34, %v125_v50  ;;  %v145_v8 = vmul.f32 %v138_v35, %v125_v50  ;;  %v146_v16 = vmul.f32 %v142_v36, %v125_v50 }
  0x89   :  { %v91_v59 = vadd.f32 %v87_v51, %v63_v45  ;;  %v92_v60 = vadd.f32 %v88_v52, %v64_v46  ;;  %v93_v61 = vadd.f32 %v89_v53, %v65_v47  ;;  %v94_v62 = vadd.f32 %v90_v54, %v66_v48  ;;  %v880_v54 = vld [vmem:[%s1050_s4] sm:$0x3f] }
  0x8b   :  { %v119_v17 = vadd.f32 %v115_v55, %v91_v59  ;;  %v120_v19 = vadd.f32 %v116_v56, %v92_v60  ;;  %v121_v20 = vadd.f32 %v117_v57, %v93_v61  ;;  %v122_v23 = vadd.f32 %v118_v58, %v94_v62  ;;  %v153_v29 = vpop.permute.xlu1 %152  ;;  %v181_v30 = vpop.permute.xlu0 %180 }
  0x8c   :  { %v171_v31 = vmul.f32 %v158_v37, %v153_v29  ;;  %v172_v32 = vmul.f32 %v162_v38, %v153_v29  ;;  %v173_v21 = vmul.f32 %v166_v39, %v153_v29  ;;  %v174_v25 = vmul.f32 %v170_v40, %v153_v29 }
  0x8d   :  { %v147_v26 = vadd.f32 %v143_v63, %v119_v17  ;;  %v148_v24 = vadd.f32 %v144_v2, %v120_v19  ;;  %v149_v27 = vadd.f32 %v145_v8, %v121_v20  ;;  %v150_v45 = vadd.f32 %v146_v16, %v122_v23 }
  0x8e   :  { %v199_v46 = vmul.f32 %v186_v41, %v181_v30  ;;  %v200_v47 = vmul.f32 %v190_v42, %v181_v30  ;;  %v201_v33 = vmul.f32 %v194_v43, %v181_v30  ;;  %v202_v34 = vmul.f32 %v198_v44, %v181_v30  ;;  %v207_v44 = vld [vmem:[%s1049_s2] sm:$0x3f] }
  0x8f   :  { %v175_v35 = vadd.f32 %v171_v31, %v147_v26  ;;  %v176_v36 = vadd.f32 %v172_v32, %v148_v24  ;;  %v177_v48 = vadd.f32 %v173_v21, %v149_v27  ;;  %v178_v49 = vadd.f32 %v174_v25, %v150_v45  ;;  %v208_v30 = vld [vmem:[%s1051_s3] sm:$0x3f]  ;;  %s714_s3 = smov 9  }
  0x90   :  { %v711_v31 = vmov 6   ;;  %v712_v32 = vmov 7   ;;  %v713_v21 = vmov 8  }
  0x91   :  { %v203_v50 = vadd.f32 %v199_v46, %v175_v35  ;;  %v204_v51 = vadd.f32 %v200_v47, %v176_v36  ;;  %v205_v52 = vadd.f32 %v201_v33, %v177_v48  ;;  %v206_v37 = vadd.f32 %v202_v34, %v178_v49 }
  0x93   :  { %v210_v38 = vsel %vm209_vm0, %v203_v50, 0.0  ;;  %v211_v39 = vsel %vm209_vm0, %v204_v51, 0.0  ;;  %v213_v53 = vsel %vm209_vm0, %v205_v52, 0.0  ;;  %v215_v42 = vsel %vm209_vm0, %v206_v37, 0.0 }
  0x94   :  { %v212_v40 = vadd.f32 %v211_v39, %v210_v38 }
  0x96   :  { %v214_v41 = vadd.f32 %v213_v53, %v212_v40 }
  0x98   :  { %v216_v43 = vadd.f32 %v215_v42, %v214_v41  ;;  %v399_v41 = vld [vmem:[%s1052_s6] sm:$0x3f] }
  0x99   :  { %v426_v42 = vld [vmem:[%s1053_s7] sm:$0xff] }
  0x9a   :  { %217 = vadd.xlane.f32.xlu1 %v216_v43  ;;  %v936_v43 = vld [vmem:[%s1053_s7 + $0x8] sm:$0xff] }
  0xab   :  { %247 = vperm.xlu1 %671, %v207_v44   ;;  %v942_v44 = vld [vmem:[%s1053_s7 + $0x10] sm:$0xff] }
  0xaf   :  { %309 = vperm.xlu1 %671, %v880_v54  }
  0xb3   :  { %673 = vset.pattern.permute.xlu1 %v707_v3 }
  0xb4   :  { %322 = vperm.xlu1 %673, %v880_v54  }
  0xb8   :  { %674 = vset.pattern.permute.xlu1 %v706_v1 }
  0xb9   :  { %335 = vperm.xlu1 %674, %v880_v54  }
  0xbd   :  { %675 = vset.pattern.permute.xlu1 %v708_v4 }
  0xbe   :  { %348 = vperm.xlu1 %675, %v880_v54  }
  0xc2   :  { %676 = vset.pattern.permute.xlu1 %v709_v5 }
  0xc3   :  { %355 = vperm.xlu1 %676, %v880_v54  }
  0xc7   :  { %678 = vset.pattern.permute.xlu1 %v711_v31 }
  0xc8   :  { %375 = vperm.xlu1 %678, %v880_v54  }
  0xcc   :  { %680 = vset.pattern.permute.xlu1 %v713_v21 }
 0x127   :  { %v218_v55 = vpop.xlane.xlu1 %217 }
 0x128   :  { %v220_v56 = vmul.f32 0.001953125, %v218_v55 }
 0x12a   :  { %v221_v57 = vsub.f32 %v203_v50, %v220_v56  ;;  %v222_v58 = vsub.f32 %v204_v51, %v220_v56  ;;  %v223_v59 = vsub.f32 %v205_v52, %v220_v56  ;;  %v224_v60 = vsub.f32 %v206_v37, %v220_v56 }
 0x12b   :  { %v248_v33 = vpop.permute.xlu1 %247 }
 0x12c   :  { %v225_v61 = vmul.f32 %v221_v57, %v221_v57  ;;  %v226_v62 = vmul.f32 %v222_v58, %v222_v58  ;;  %v227_v63 = vmul.f32 %v223_v59, %v223_v59  ;;  %v228_v2 = vmul.f32 %v224_v60, %v224_v60 }
 0x12e   :  { %v229_v8 = vsel %vm209_vm0, %v225_v61, 0.0  ;;  %v230_v16 = vsel %vm209_vm0, %v226_v62, 0.0  ;;  %v232_v19 = vsel %vm209_vm0, %v227_v63, 0.0  ;;  %v234_v23 = vsel %vm209_vm0, %v228_v2, 0.0 }
 0x12f   :  { %v231_v17 = vadd.f32 %v230_v16, %v229_v8  ;;  %v717_v63 = vmov 0.0  }
 0x131   :  { %v233_v20 = vadd.f32 %v232_v19, %v231_v17 }
 0x133   :  { %v235_v29 = vadd.f32 %v234_v23, %v233_v20 }
 0x135   :  { %236 = vadd.xlane.f32.xlu0 %v235_v29 }
 0x14b   :  { %256 = vperm.xlu0 %672, %v208_v30  }
 0x14f   :  { %677 = vset.pattern.permute.xlu0 %v710_v6 }
 0x150   :  { %362 = vperm.xlu0 %677, %v880_v54  }
 0x154   :  { %679 = vset.pattern.permute.xlu0 %v712_v32 }
 0x155   :  { %382 = vperm.xlu0 %679, %v880_v54  }
 0x159   :  { %681 = vset.pattern.permute.xlu0 %v705_v0 }
 0x1c2   :  { %v237_v25 = vpop.xlane.xlu0 %236 }
 0x1c3   :  { %v238_v26 = vmul.f32 0.001953125, %v237_v25 }
 0x1c5   :  { %v239_v24 = vadd.f32 1e-05, %v238_v26 }
 0x1c7   :  { %695 = vrsqrt.f32 %v239_v24 }
 0x1ca   :  { %v257_v48 = vpop.permute.xlu0 %256 }
 0x1d1   :  { %v696_v27 = vpop.eup %695 }
 0x1d2   :  { %v244_v45 = vmul.f32 %v696_v27, %v224_v60  ;;  %v243_v46 = vmul.f32 %v696_v27, %v223_v59  ;;  %v241_v47 = vmul.f32 %v696_v27, %v221_v57  ;;  %v242_v52 = vmul.f32 %v696_v27, %v222_v58 }
 0x1d3   :  { %v268_v58 = vand.u32 127, %v47_v7 }
 0x1d4   :  { %v253_v34 = vmul.f32 %v248_v33, %v244_v45  ;;  %v252_v35 = vmul.f32 %v248_v33, %v243_v46  ;;  %v250_v36 = vmul.f32 %v248_v33, %v241_v47  ;;  %v251_v38 = vmul.f32 %v248_v33, %v242_v52  ;;  %v363_v33 = vpop.permute.xlu0 %362 }
 0x1d5   :  { %v273_v60 = vand.u32 7, %v268_v58  ;;  %v288_v61 = vand.u32 63, %v268_v58 }
 0x1d6   :  { %v262_v49 = vadd.f32 %v257_v48, %v253_v34  ;;  %v903_v50 = vadd.f32 %v257_v48, %v250_v36  ;;  %v907_v37 = vadd.f32 %v257_v48, %v252_v35  ;;  %v915_v40 = vadd.f32 %v257_v48, %v251_v38 }
 0x1d7   :  { %vm281_vm1 = vcmp.ne.s32.totalorder %v273_v60, 0  ;;  %vm296_vm2 = vcmp.ge.s32.totalorder %v288_v61, 8 }
 0x1d8   :  { %v905_v51 = vmax.f32 %v262_v49, 0.0  ;;  %v265_v39 = vmax.f32 %v907_v37, 0.0  ;;  %v264_v53 = vmax.f32 %v915_v40, 0.0  ;;  %v955_v2 = vsel %vm281_vm1, 1.0, %v717_v63  ;;  %v383_v38 = vpop.permute.xlu0 %382  ;;  %v398_v40 = vld [vmem:[%s1054_s5] sm:$0x3f] }
 0x1d9   :  { %v957_v8 = vsel %vm296_vm2, 1.0, %v717_v63  ;;  %v263_v25 = vmax.f32 %v903_v50, 0.0 }
 0x1da   :  { %301 = vrot.lane.b32.xlu1 %v905_v51, %s714_s3  ;;  %v961_v17 = vmul.f32 %v957_v8, %v955_v2  ;;  %v365_v34 = vmul.f32 %v363_v33, %v264_v53  ;;  %v385_v50 = vmul.f32 %v383_v38, %v265_v39 }
 0x1de   :  { %315 = vrot.lane.b32.xlu1 %v265_v39, %s715_s29 }
 0x1e2   :  { %328 = vrot.lane.b32.xlu1 %v905_v51, %s715_s29 }
 0x1e6   :  { %341 = vrot.lane.b32.xlu1 %v264_v53, %s716_s30 }
 0x1ea   :  { %389 = vperm.xlu1 %680, %v880_v54   ;;  %v310_v54 = vpop.permute.xlu1 %309 }
 0x1ee   :  { %368 = vrot.lane.b32.xlu1 %v905_v51, %s716_s30  ;;  %v323_v55 = vpop.permute.xlu1 %322 }
 0x1ef   :  { %682 = vset.pattern.permute.xlu1 %v705_v0 }
 0x1f2   :  { %422 = vperm.xlu1 %682, %v399_v41   ;;  %v336_v56 = vpop.permute.xlu1 %335 }
 0x1f6   :  { %431 = vperm.xlu1 %682, %v426_v42   ;;  %v349_v57 = vpop.permute.xlu1 %348 }
 0x1fa   :  { %436 = vperm.xlu1 %682, %v936_v43   ;;  %v356_v59 = vpop.permute.xlu1 %355 }
 0x1fb   :  { %v358_v46 = vmul.f32 %v356_v59, %v263_v25 }
 0x1fe   :  { %441 = vperm.xlu1 %682, %v942_v44   ;;  %v376_v62 = vpop.permute.xlu1 %375 }
 0x202   :  { %683 = vset.pattern.permute.xlu1 %v707_v3 }
 0x203   :  { %452 = vperm.xlu1 %683, %v426_v42  }
 0x207   :  { %456 = vperm.xlu1 %683, %v936_v43  }
 0x20b   :  { %685 = vset.pattern.permute.xlu1 %v706_v1 }
 0x20c   :  { %474 = vperm.xlu1 %685, %v426_v42  }
 0x210   :  { %478 = vperm.xlu1 %685, %v936_v43  }
 0x214   :  { %687 = vset.pattern.permute.xlu1 %v708_v4 }
 0x215   :  { %496 = vperm.xlu1 %687, %v426_v42  }
 0x219   :  { %500 = vperm.xlu1 %687, %v936_v43  }
 0x21d   :  { %689 = vset.pattern.permute.xlu1 %v709_v5 }
 0x21e   :  { %518 = vperm.xlu1 %689, %v426_v42  }
 0x222   :  { %522 = vperm.xlu1 %689, %v936_v43  }
 0x226   :  { %691 = vset.pattern.permute.xlu1 %v710_v6 }
 0x227   :  { %540 = vperm.xlu1 %691, %v426_v42  }
 0x24c   :  { %v302_v16 = vpop.permute.xlu1 %301 }
 0x24d   :  { %v305_v7 = vmul.f32 %v302_v16, %v961_v17 }
 0x24f   :  { %v312_v31 = vmul.f32 %v310_v54, %v305_v7 }
 0x250   :  { %v316_v19 = vpop.permute.xlu1 %315 }
 0x251   :  { %v319_v20 = vmul.f32 %v957_v8, %v316_v19 }
 0x253   :  { %v325_v29 = vmul.f32 %v323_v55, %v319_v20 }
 0x254   :  { %v329_v23 = vpop.permute.xlu1 %328 }
 0x255   :  { %v332_v30 = vmul.f32 %v957_v8, %v329_v23  ;;  %v326_v26 = vadd.f32 %v325_v29, %v312_v31 }
 0x257   :  { %v338_v32 = vmul.f32 %v336_v56, %v332_v30 }
 0x258   :  { %v342_v21 = vpop.permute.xlu1 %341 }
 0x259   :  { %v345_v24 = vmul.f32 %v955_v2, %v342_v21  ;;  %v339_v27 = vadd.f32 %v338_v32, %v326_v26 }
 0x25b   :  { %v351_v45 = vmul.f32 %v349_v57, %v345_v24 }
 0x25d   :  { %v352_v47 = vadd.f32 %v351_v45, %v339_v27 }
 0x25f   :  { %v359_v35 = vadd.f32 %v358_v46, %v352_v47 }
 0x261   :  { %v366_v36 = vadd.f32 %v365_v34, %v359_v35 }
 0x269   :  { %v390_v48 = vpop.permute.xlu1 %389 }
 0x26a   :  { %v392_v54 = vmul.f32 %v390_v48, %v905_v51 }
 0x26d   :  { %v369_v49 = vpop.permute.xlu1 %368 }
 0x26e   :  { %v372_v52 = vmul.f32 %v955_v2, %v369_v49 }
 0x270   :  { %v378_v41 = vmul.f32 %v376_v62, %v372_v52 }
 0x272   :  { %v379_v42 = vadd.f32 %v378_v41, %v366_v36 }
 0x274   :  { %v386_v55 = vadd.f32 %v385_v50, %v379_v42 }
 0x276   :  { %v393_v56 = vadd.f32 %v392_v54, %v386_v55 }
 0x278   :  { %v400_v57 = vsel %vm209_vm0, %v393_v56, 0.0 }
 0x279   :  { %401 = vadd.xlane.f32.xlu0 %v400_v57 }
 0x28f   :  { %416 = vperm.xlu0 %681, %v398_v40   ;;  %v561_v40 = vld [vmem:[%s1055_s8] sm:$0xff] }
 0x293   :  { %684 = vset.pattern.permute.xlu0 %v707_v3 }
 0x294   :  { %460 = vperm.xlu0 %684, %v942_v44  }
 0x298   :  { %686 = vset.pattern.permute.xlu0 %v706_v1 }
 0x299   :  { %482 = vperm.xlu0 %686, %v942_v44  }
 0x29d   :  { %688 = vset.pattern.permute.xlu0 %v708_v4  ;;  %v423_v4 = vpop.permute.xlu1 %422 }
 0x29e   :  { %504 = vperm.xlu0 %688, %v942_v44  }
 0x2a2   :  { %690 = vset.pattern.permute.xlu0 %v709_v5  ;;  %v432_v5 = vpop.permute.xlu1 %431 }
 0x2a3   :  { %526 = vperm.xlu0 %690, %v942_v44  }
 0x2a6   :  { %v437_v53 = vpop.permute.xlu1 %436 }
 0x2a7   :  { %692 = vset.pattern.permute.xlu0 %v710_v6 }
 0x2a8   :  { %548 = vperm.xlu0 %692, %v942_v44  }
 0x2aa   :  { %v442_v58 = vpop.permute.xlu1 %441 }
 0x2ac   :  { %693 = vset.pattern.permute.xlu0 %v705_v0 }
 0x2ae   :  { %v453_v6 = vpop.permute.xlu1 %452 }
 0x2b2   :  { %v457_v59 = vpop.permute.xlu1 %456 }
 0x2b6   :  { %v475_v44 = vpop.permute.xlu1 %474 }
 0x2ba   :  { %v479_v60 = vpop.permute.xlu1 %478 }
 0x2be   :  { %v497_v61 = vpop.permute.xlu1 %496 }
 0x2c2   :  { %v501_v62 = vpop.permute.xlu1 %500 }
 0x2c6   :  { %v519_v63 = vpop.permute.xlu1 %518 }
 0x2ca   :  { %v523_v16 = vpop.permute.xlu1 %522 }
 0x2ce   :  { %v541_v19 = vpop.permute.xlu1 %540 }
 0x306   :  { %v402_v3 = vpop.xlane.xlu0 %401 }
 0x307   :  { %v404_v51 = vmul.f32 0.0078125, %v402_v3 }
 0x309   :  { %v405_v37 = vsub.f32 %v393_v56, %v404_v51 }
 0x30b   :  { %v406_v1 = vmul.f32 %v405_v37, %v405_v37 }
 0x30d   :  { %v407_v39 = vsel %vm209_vm0, %v406_v1, 0.0 }
 0x30e   :  { %408 = vadd.xlane.f32.xlu1 %v407_v39 }
 0x31f   :  { %544 = vperm.xlu1 %691, %v936_v43  }
 0x323   :  { %694 = vset.pattern.permute.xlu1 %v705_v0  ;;  %v417_v0 = vpop.permute.xlu0 %416 }
 0x39b   :  { %v409_v20 = vpop.xlane.xlu1 %408 }
 0x39c   :  { %v410_v7 = vmul.f32 0.0078125, %v409_v20 }
 0x39e   :  { %v411_v23 = vadd.f32 1e-05, %v410_v7 }
 0x39f   :  { %v545_v42 = vpop.permute.xlu1 %544 }
 0x3a0   :  { %697 = vrsqrt.f32 %v411_v23 }
 0x3aa   :  { %v698_v43 = vpop.eup %697 }
 0x3ab   :  { %v413_v29 = vmul.f32 %v698_v43, %v405_v37 }
 0x3ad   :  { %v419_v30 = vmul.f32 %v417_v0, %v413_v29 }
 0x3af   :  { %v425_v31 = vadd.f32 %v423_v4, %v419_v30 }
 0x3b1   :  { %v447_v32 = vrot.slane %v425_v31, %v790_v9  ;;  %v466_v21 = vrot.slane %v425_v31, %v814_v15  ;;  %v488_v26 = vrot.slane %v425_v31, %v802_v12  ;;  %v510_v27 = vrot.slane %v425_v31, %v820_v18 }
 0x3b2   :  { %v532_v47 = vrot.slane %v425_v31, %v828_v22  ;;  %v554_v48 = vrot.slane %v425_v31, %v836_v28  ;;  %v461_v28 = vpop.permute.xlu0 %460 }
 0x3b3   :  { %v467_v25 = vmul.f32 %v466_v21, %v453_v6  ;;  %v468_v24 = vmul.f32 %v466_v21, %v457_v59  ;;  %v448_v45 = vmul.f32 %v447_v32, %v432_v5  ;;  %v449_v46 = vmul.f32 %v447_v32, %v437_v53 }
 0x3b4   :  { %v489_v34 = vmul.f32 %v488_v26, %v475_v44  ;;  %v490_v36 = vmul.f32 %v488_v26, %v479_v60  ;;  %v511_v9 = vmul.f32 %v510_v27, %v497_v61  ;;  %v512_v15 = vmul.f32 %v510_v27, %v501_v62 }
 0x3b5   :  { %v470_v33 = vadd.f32 %v467_v25, %v448_v45  ;;  %v471_v35 = vadd.f32 %v468_v24, %v449_v46  ;;  %v533_v41 = vmul.f32 %v532_v47, %v519_v63  ;;  %v534_v50 = vmul.f32 %v532_v47, %v523_v16  ;;  %v563_v16 = vld [vmem:[%s1055_s8 + $0x10] sm:$0xff] }
 0x3b6   :  { %v555_v54 = vmul.f32 %v554_v48, %v541_v19  ;;  %v556_v55 = vmul.f32 %v554_v48, %v545_v42  ;;  %v483_v3 = vpop.permute.xlu0 %482  ;;  %v450_v51 = vmul.f32 %v447_v32, %v442_v58  ;;  %v469_v37 = vmul.f32 %v466_v21, %v461_v28  ;;  %v562_v58 = vld [vmem:[%s1055_s8 + $0x8] sm:$0xff]  ;;  %v564_v19 = vld [vmem:[%s1056_s9] sm:$0xff]  ;;  %v566_v32 = vld [vmem:[%s1056_s9 + $0x10] sm:$0xff] }
 0x3b7   :  { %v492_v49 = vadd.f32 %v489_v34, %v470_v33  ;;  %v493_v52 = vadd.f32 %v490_v36, %v471_v35  ;;  %v491_v4 = vmul.f32 %v488_v26, %v483_v3 }
 0x3b8   :  { %v472_v39 = vadd.f32 %v469_v37, %v450_v51 }
 0x3b9   :  { %v514_v38 = vadd.f32 %v511_v9, %v492_v49  ;;  %v515_v12 = vadd.f32 %v512_v15, %v493_v52 }
 0x3ba   :  { %v505_v1 = vpop.permute.xlu0 %504  ;;  %v494_v5 = vadd.f32 %v491_v4, %v472_v39 }
 0x3bb   :  { %v536_v18 = vadd.f32 %v533_v41, %v514_v38  ;;  %v537_v56 = vadd.f32 %v534_v50, %v515_v12  ;;  %v513_v6 = vmul.f32 %v510_v27, %v505_v1 }
 0x3bd   :  { %v558_v22 = vadd.f32 %v555_v54, %v536_v18  ;;  %v559_v57 = vadd.f32 %v556_v55, %v537_v56  ;;  %v516_v59 = vadd.f32 %v513_v6, %v494_v5  ;;  %v565_v54 = vld [vmem:[%s1056_s9 + $0x8] sm:$0xff] }
 0x3be   :  { %v527_v53 = vpop.permute.xlu0 %526 }
 0x3bf   :  { %567 = vadd.xlane.f32.xlu1 %v558_v22  ;;  %569 = vadd.xlane.f32.xlu0 %v559_v57  ;;  %v535_v44 = vmul.f32 %v532_v47, %v527_v53 }
 0x3c1   :  { %v538_v61 = vadd.f32 %v535_v44, %v516_v59 }
 0x3c2   :  { %v549_v60 = vpop.permute.xlu0 %548 }
 0x3c3   :  { %v557_v62 = vmul.f32 %v554_v48, %v549_v60 }
 0x3c5   :  { %v560_v63 = vadd.f32 %v557_v62, %v538_v61 }
 0x3d0   :  { %303 = vrot.lane.b32.xlu1 %v812_v14, %s714_s3 }
 0x3d5   :  { %317 = vrot.lane.b32.xlu0 %v807_v13, %s715_s29 }
 0x3d9   :  { %602 = vperm.xlu0 %693, %v561_v40  }
 0x3dd   :  { %370 = vrot.lane.b32.xlu0 %v812_v14, %s716_s30 }
 0x3f4   :  { %571 = vadd.xlane.f32.xlu1 %v560_v63 }
 0x405   :  { %330 = vrot.lane.b32.xlu1 %v812_v14, %s715_s29 }
 0x409   :  { %343 = vrot.lane.b32.xlu1 %v800_v11, %s716_s30 }
 0x40d   :  { %607 = vperm.xlu1 %694, %v562_v58  }
 0x411   :  { %612 = vperm.xlu1 %694, %v563_v16  }
 0x415   :  { %620 = vperm.xlu1 %694, %v564_v19  }
 0x44c   :  { %v568_v20 = vpop.xlane.xlu1 %567  ;;  %v570_v7 = vpop.xlane.xlu0 %569 }
 0x44d   :  { %v573_v23 = vmul.f32 0.0078125, %v568_v20  ;;  %v574_v43 = vmul.f32 0.0078125, %v570_v7 }
 0x44f   :  { %v576_v29 = vsub.f32 %v558_v22, %v573_v23  ;;  %v577_v0 = vsub.f32 %v559_v57, %v574_v43 }
 0x450   :  { %v304_v21 = vpop.permute.xlu1 %303  ;;  %v318_v25 = vpop.permute.xlu0 %317 }
 0x451   :  { %v579_v30 = vmul.f32 %v576_v29, %v576_v29  ;;  %v580_v31 = vmul.f32 %v577_v0, %v577_v0  ;;  %v320_v27 = vmul.f32 %v957_v8, %v318_v25  ;;  %v306_v45 = vmul.f32 %v304_v21, %v961_v17 }
 0x453   :  { %582 = vadd.xlane.f32.xlu0 %v579_v30  ;;  %584 = vadd.xlane.f32.xlu1 %v580_v31  ;;  %v327_v36 = vadd.f32 %v320_v27, %v306_v45 }
 0x458   :  { %v603_v33 = vpop.permute.xlu0 %602 }
 0x45c   :  { %v371_v52 = vpop.permute.xlu0 %370 }
 0x45d   :  { %v373_v41 = vmul.f32 %v955_v2, %v371_v52 }
 0x464   :  { %630 = vperm.xlu1 %694, %v566_v32  }
 0x481   :  { %v572_v26 = vpop.xlane.xlu1 %571 }
 0x482   :  { %v575_v24 = vmul.f32 0.0078125, %v572_v26 }
 0x484   :  { %v578_v46 = vsub.f32 %v560_v63, %v575_v24 }
 0x485   :  { %v331_v47 = vpop.permute.xlu1 %330 }
 0x486   :  { %v333_v34 = vmul.f32 %v957_v8, %v331_v47  ;;  %v581_v35 = vmul.f32 %v578_v46, %v578_v46 }
 0x488   :  { %586 = vadd.xlane.f32.xlu0 %v581_v35  ;;  %v340_v49 = vadd.f32 %v333_v34, %v327_v36 }
 0x489   :  { %v344_v48 = vpop.permute.xlu1 %343 }
 0x48a   :  { %v346_v9 = vmul.f32 %v955_v2, %v344_v48 }
 0x48c   :  { %v353_v15 = vadd.f32 %v346_v9, %v340_v49 }
 0x48e   :  { %v360_v38 = vadd.f32 %v353_v15, %v795_v10 }
 0x490   :  { %v367_v17 = vadd.f32 %v360_v38, %v800_v11  ;;  %v608_v11 = vpop.permute.xlu1 %607 }
 0x492   :  { %v380_v12 = vadd.f32 %v373_v41, %v367_v17 }
 0x494   :  { %v387_v50 = vadd.f32 %v380_v12, %v807_v13  ;;  %v613_v56 = vpop.permute.xlu1 %612 }
 0x496   :  { %v394_v8 = vadd.f32 %v387_v50, %v812_v14 }
 0x498   :  { %v395_v42 = vmul.f32 0.11111111, %v394_v8  ;;  %v621_v57 = vpop.permute.xlu1 %620 }
 0x49a   :  { %v396_v18 = vmax.f32 %v395_v42, 0.0 }
 0x49c   :  { %397 = vst [vmem:[%s1057_s10] sm:$0x3f] %v396_v18 }
 0x49e   :  { %625 = vperm.xlu0 %693, %v565_v54  }
 0x4e0   :  { %v583_v10 = vpop.xlane.xlu0 %582  ;;  %v585_v3 = vpop.xlane.xlu1 %584 }
 0x4e1   :  { %v588_v2 = vmul.f32 0.0078125, %v583_v10  ;;  %v589_v51 = vmul.f32 0.0078125, %v585_v3 }
 0x4e3   :  { %v591_v55 = vadd.f32 1e-05, %v588_v2  ;;  %v592_v37 = vadd.f32 1e-05, %v589_v51 }
 0x4e4   :  { %v631_v58 = vpop.permute.xlu1 %630 }
 0x4e5   :  { %699 = vrsqrt.f32 %v591_v55 }
 0x4e6   :  { %701 = vrsqrt.f32 %v592_v37 }
 0x4ef   :  { %v700_v13 = vpop.eup %699 }
 0x4f0   :  { %v597_v22 = vmul.f32 %v700_v13, %v576_v29  ;;  %v702_v1 = vpop.eup %701 }
 0x4f1   :  { %v598_v53 = vmul.f32 %v702_v1, %v577_v0 }
 0x4f2   :  { %v615_v14 = vmul.f32 %v603_v33, %v597_v22 }
 0x4f3   :  { %v616_v6 = vmul.f32 %v608_v11, %v598_v53 }
 0x4f4   :  { %v633_v28 = vadd.f32 %v621_v57, %v615_v14 }
 0x4f6   :  { %v636_v40 = vmax.f32 %v633_v28, 0.0 }
 0x4f8   :  { %639 = vst [vmem:[%s1058_s11] sm:$0xff] %v636_v40 }
 0x515   :  { %v587_v39 = vpop.xlane.xlu0 %586 }
 0x516   :  { %v590_v4 = vmul.f32 0.0078125, %v587_v39 }
 0x518   :  { %v593_v5 = vadd.f32 1e-05, %v590_v4 }
 0x51a   :  { %703 = vrsqrt.f32 %v593_v5 }
 0x51d   :  { %v626_v59 = vpop.permute.xlu0 %625 }
 0x51e   :  { %v634_v44 = vadd.f32 %v626_v59, %v616_v6 }
 0x520   :  { %v637_v60 = vmax.f32 %v634_v44, 0.0 }
 0x522   :  { %640 = vst [vmem:[%s1058_s11 + $0x8] sm:$0xff] %v637_v60 }
 0x524   :  { %v704_v61 = vpop.eup %703 }
 0x525   :  { %v599_v62 = vmul.f32 %v704_v61, %v578_v46 }
 0x527   :  { %v617_v63 = vmul.f32 %v613_v56, %v599_v62 }
 0x529   :  { %v635_v16 = vadd.f32 %v631_v58, %v617_v63 }
 0x52b   :  { %v638_v19 = vmax.f32 %v635_v16, 0.0 }
 0x52d   :  { %641 = vst [vmem:[%s1058_s11 + $0x10] sm:$0xff] %v638_v19 }

</bundles_post_ra>
